<compile_context>
chip_gen: v5e
topology: v5e:2x2
jax: 0.10.0
libtpu: 0.0.40
codegen_flags: <defaults>
</compile_context>

<pallas_src>
import functools

import jax
import jax.numpy as jnp
from jax.experimental import pallas as pl
from jax.experimental.pallas import tpu as pltpu

LANE = 128  # TPU vreg lane width


# ---------------------------------------------------------------------------
# Kernels
# ---------------------------------------------------------------------------
def _mlp(x_ref, w1_ref, b1_ref, w2_ref, b2_ref, w3_ref, b3_ref):
    """fc1->ReLU->fc2->ReLU->fc3 on one batch tile.  f32 accumulation."""
    # x arrives pre-cast to the weight storage dtype (done once in the wrapper).
    h1 = jnp.dot(x_ref[...], w1_ref[...], preferred_element_type=jnp.float32)
    h1 = jnp.maximum(h1 + b1_ref[...], 0.0)

    h2 = jnp.dot(h1.astype(w2_ref.dtype), w2_ref[...],
                 preferred_element_type=jnp.float32)
    h2 = jnp.maximum(h2 + b2_ref[...], 0.0)

    return jnp.dot(h2.astype(w3_ref.dtype), w3_ref[...],
                   preferred_element_type=jnp.float32) + b3_ref[...]


def dqn_kernel(x_ref, w1_ref, b1_ref, w2_ref, b2_ref, w3_ref, b3_ref, o_ref):
    """forward(): returns Q-values (lane-dense [TB, 128] slab)."""
    o_ref[...] = _mlp(x_ref, w1_ref, b1_ref, w2_ref, b2_ref,
                      w3_ref, b3_ref).astype(o_ref.dtype)


def dqn_act_kernel(n_action, x_ref, w1_ref, b1_ref, w2_ref, b2_ref,
                   w3_ref, b3_ref, a_ref):
    """Acting path: greedy argmax over the true action columns, [TB, 1] int32."""
    q = _mlp(x_ref, w1_ref, b1_ref, w2_ref, b2_ref, w3_ref, b3_ref)
    lane = jax.lax.broadcasted_iota(jnp.int32, q.shape, 1)
    valid = lane < n_action                      # mask padded (exactly-zero) columns
    qm = jnp.where(valid, q, jnp.float32(-3.0e38))
    qmax = jnp.max(qm, axis=-1, keepdims=True)
    lane_f = lane.astype(jnp.float32)
    # First (lowest-index) maximal Q -> matches torch.argmax tie-breaking.
    idx_f = jnp.min(jnp.where(qm == qmax, lane_f, jnp.float32(n_action)),
                    axis=-1, keepdims=True)
    a_ref[...] = idx_f.astype(jnp.int32)


# ---------------------------------------------------------------------------
# Wrappers
# ---------------------------------------------------------------------------
def _round_up(n, m):
    return ((n + m - 1) // m) * m


def _cdiv(a, b):
    return -(-a // b)


def _pad_to(a, shape):
    return jnp.pad(a, [(0, t - s) for s, t in zip(a.shape, shape)])


def prepare_params(w1, b1, w2, b2, w3, b3, weights_dtype=None):
    """One-time padding/cast of DQN parameters (hoisted out of the call path).

    Weights are [in, out] (pre-transposed); biases [out] or [1, out].
    Hidden/action output dims are zero-padded to 128 lanes (numerically exact:
    padded units have zero weight and zero bias, stay 0 through ReLU).  The
    state (input) dim of W1 is left unpadded so x streams its true width.
    """
    if weights_dtype is not None:
        wd = jnp.dtype(weights_dtype)
        if not jnp.issubdtype(wd, jnp.floating):
            raise ValueError(
                "Integer weight dtypes need a scale/zero-point quantized path "
                "(int8 MXU only exists on v5e/v6e; v7x is fp8-only). Use f32 or "
                "bfloat16 here.")

    state, hidden = w1.shape
    action = w3.shape[1]
    Hp = _round_up(hidden, LANE)
    Ap = _round_up(action, LANE)

    w1p = _pad_to(w1, (state, Hp))
    w2p = _pad_to(w2, (Hp, Hp))
    w3p = _pad_to(w3, (Hp, Ap))
    b1p = _pad_to(jnp.asarray(b1).reshape(1, -1), (1, Hp)).astype(jnp.float32)
    b2p = _pad_to(jnp.asarray(b2).reshape(1, -1), (1, Hp)).astype(jnp.float32)
    b3p = _pad_to(jnp.asarray(b3).reshape(1, -1), (1, Ap)).astype(jnp.float32)

    if weights_dtype is not None:
        w1p, w2p, w3p = (w.astype(weights_dtype) for w in (w1p, w2p, w3p))

    return (w1p, b1p, w2p, b2p, w3p, b3p)


def _pick_tile(B, block_b):
    """Batch tile (multiple of 8 sublanes); keep >=2 grid tiles for big batches
    so the 'parallel' axis lands on both v7x TensorCores."""
    Bp8 = _round_up(max(B, 8), 8)
    TB = min(_round_up(block_b, 8), Bp8)
    if Bp8 // TB < 2 and Bp8 >= 256:
        TB = _round_up(_cdiv(Bp8, 2), 8)
    Bp = _round_up(B, TB)
    return TB, Bp


def _launch(kernel_fn, xw, params, out_shape, out_block, TB, grid, cost):
    state = xw.shape[1]
    # Weights/biases: constant block index -> fetched once, VMEM-resident across
    # all batch tiles.  (Single-buffering them via pipeline_mode=pl.Buffered(1)
    # would save ~0.4 MiB of VMEM headroom on v7x; left default-buffered here
    # since headroom is ample at these widths.)
    const = lambda a: pl.BlockSpec(a.shape, lambda i: (0, 0))
    return pl.pallas_call(
        kernel_fn,
        out_shape=out_shape,
        grid=grid,
        in_specs=[pl.BlockSpec((TB, state), lambda i: (i, 0))]
                 + [const(a) for a in params],
        out_specs=pl.BlockSpec(out_block, lambda i: (i, 0)),
        compiler_params=pltpu.CompilerParams(
            dimension_semantics=("parallel",),  # megacore sharding on v7x
        ),
        cost_estimate=cost,
    )(xw, *params)


def _cost_estimate(B, state, hidden, action, x_bytes, params, out_bytes):
    return pl.CostEstimate(
        flops=2 * B * (state * hidden + hidden * hidden + hidden * action),
        transcendentals=0,
        bytes_accessed=int(x_bytes)
        + int(sum(a.size * a.dtype.itemsize for a in params))
        + int(out_bytes),
    )


@functools.partial(jax.jit,
                   static_argnames=("action_size", "hidden_size", "block_b"))
def dqn_forward(x, params, *, action_size, hidden_size, block_b=512):
    """forward(): Q-values [B, action_size].  x: [B, state] (f32 or bf16)."""
    w1p = params[0]
    w3p = params[4]
    B, state = x.shape
    Ap = w3p.shape[1]

    TB, Bp = _pick_tile(B, block_b)
    grid = (Bp // TB,)

    # bf16 path: transport x in the weight storage dtype (halves streamed bytes).
    xw = x if x.dtype == w1p.dtype else x.astype(w1p.dtype)
    if Bp != B:
        xw = jnp.pad(xw, ((0, Bp - B), (0, 0)))

    cost = _cost_estimate(B, state, hidden_size, action_size,
                          xw.size * xw.dtype.itemsize, params,
                          B * action_size * 4)

    out_padded = _launch(
        dqn_kernel, xw, params,
        out_shape=jax.ShapeDtypeStruct((Bp, Ap), jnp.float32),
        out_block=(TB, Ap), TB=TB, grid=grid, cost=cost)

    # Slice the lane-dense [Bp, 128] slab back to the true [B, action] result.
    return out_padded[:B, :action_size]


@functools.partial(jax.jit,
                   static_argnames=("action_size", "hidden_size", "block_b"))
def dqn_greedy_action(x, params, *, action_size, hidden_size, block_b=512):
    """Acting path: fused in-kernel argmax, returns int32 [B] greedy actions."""
    w1p = params[0]
    B, state = x.shape

    TB, Bp = _pick_tile(B, block_b)
    grid = (Bp // TB,)

    xw = x if x.dtype == w1p.dtype else x.astype(w1p.dtype)
    if Bp != B:
        xw = jnp.pad(xw, ((0, Bp - B), (0, 0)))

    cost = _cost_estimate(B, state, hidden_size, action_size,
                          xw.size * xw.dtype.itemsize, params, B * 4)

    actions = _launch(
        functools.partial(dqn_act_kernel, action_size), xw, params,
        out_shape=jax.ShapeDtypeStruct((Bp, 1), jnp.int32),
        out_block=(TB, 1), TB=TB, grid=grid, cost=cost)

    return actions[:B, 0]


def init_linear(key, in_dim, out_dim):
    """Deterministic init mimicking nn.Linear's uniform(-1/sqrt(in), 1/sqrt(in))."""
    kw, kb = jax.random.split(key)
    bound = 1.0 / jnp.sqrt(jnp.float32(in_dim))
    w = jax.random.uniform(kw, (in_dim, out_dim), jnp.float32, -bound, bound)
    b = jax.random.uniform(kb, (1, out_dim), jnp.float32, -bound, bound)
    return w, b


if __name__ == "__main__":
    # Module-consistent small sizes; batch=256 exercises a 2-tile batch grid.
    batch = 256
    state_size = 16
    hidden_layer_dim = 32
    action_size = 4

    key = jax.random.PRNGKey(0)
    kx, k1, k2, k3 = jax.random.split(key, 4)

    x = jax.random.normal(kx, (batch, state_size), jnp.float32)
    w1, b1 = init_linear(k1, state_size, hidden_layer_dim)
    w2, b2 = init_linear(k2, hidden_layer_dim, hidden_layer_dim)
    w3, b3 = init_linear(k3, hidden_layer_dim, action_size)

    # Pure-JAX reference of the forward-pass semantics.
    h = jnp.maximum(x @ w1 + b1, 0.0)
    h = jnp.maximum(h @ w2 + b2, 0.0)
    ref = h @ w3 + b3

    # ---- exact f32 path ----
    params = prepare_params(w1, b1, w2, b2, w3, b3)
    out = dqn_forward(x, params, action_size=action_size,
                      hidden_size=hidden_layer_dim)
    out = jax.block_until_ready(out)
    assert out.shape == (batch, action_size)
    assert jnp.allclose(out, ref, atol=1e-5, rtol=1e-5)

    # ---- bf16 weight + activation transport (valid on v5e/v6e/v7x) ----
    params_bf16 = prepare_params(w1, b1, w2, b2, w3, b3,
                                 weights_dtype=jnp.bfloat16)
    out_bf16 = dqn_forward(x, params_bf16, action_size=action_size,
                           hidden_size=hidden_layer_dim)
    out_bf16 = jax.block_until_ready(out_bf16)
    assert jnp.allclose(out_bf16, ref, atol=5e-2, rtol=5e-2)

    # ---- fused greedy-action acting path ----
    act = dqn_greedy_action(x, params, action_size=action_size,
                            hidden_size=hidden_layer_dim)
    act = jax.block_until_ready(act)
    assert act.shape == (batch,)
    assert bool(jnp.all(act == jnp.argmax(out, axis=-1)))

    # TODO(synk): optimizer (Adam) and MSELoss from __init__ are training-time
    # components, not part of forward(); not implemented in the kernel.
    print("KERNEL_OK")
</pallas_src>

<mosaic_0001>
module attributes {stable_mosaic.version = 11 : i64} {
  func.func @dqn_kernel(%arg0: i32, %arg1: memref<128x16xf32, #tpu.memory_space<vmem>>, %arg2: memref<16x128xf32, #tpu.memory_space<vmem>>, %arg3: memref<1x128xf32, #tpu.memory_space<vmem>>, %arg4: memref<128x128xf32, #tpu.memory_space<vmem>>, %arg5: memref<1x128xf32, #tpu.memory_space<vmem>>, %arg6: memref<128x128xf32, #tpu.memory_space<vmem>>, %arg7: memref<1x128xf32, #tpu.memory_space<vmem>>, %arg8: memref<128x128xf32, #tpu.memory_space<vmem>>) attributes {dimension_semantics = [#tpu.dimension_semantics<parallel>], iteration_bounds = array<i64: 2>, scalar_prefetch = 0 : i64, scratch_operands = 0 : i64, tpu.core_type = #tpu.core_type<tc>, window_params = [{transform_indices = @transform_0, window_bounds = array<i64: 128, 16>}, {pipeline_mode = #tpu.pipeline_mode<synchronous>, transform_indices = @transform_1, window_bounds = array<i64: 16, 128>}, {pipeline_mode = #tpu.pipeline_mode<synchronous>, transform_indices = @transform_2, window_bounds = array<i64: 1, 128>}, {pipeline_mode = #tpu.pipeline_mode<synchronous>, transform_indices = @transform_3, window_bounds = array<i64: 128, 128>}, {pipeline_mode = #tpu.pipeline_mode<synchronous>, transform_indices = @transform_4, window_bounds = array<i64: 1, 128>}, {pipeline_mode = #tpu.pipeline_mode<synchronous>, transform_indices = @transform_5, window_bounds = array<i64: 128, 128>}, {pipeline_mode = #tpu.pipeline_mode<synchronous>, transform_indices = @transform_6, window_bounds = array<i64: 1, 128>}, {transform_indices = @transform_7, window_bounds = array<i64: 128, 128>}]} {
    %c0 = arith.constant 0 : index
    %c0_0 = arith.constant 0 : index
    %0 = vector.load %arg1[%c0, %c0_0] : memref<128x16xf32, #tpu.memory_space<vmem>>, vector<128x16xf32>
    %c0_1 = arith.constant 0 : index
    %c0_2 = arith.constant 0 : index
    %1 = vector.load %arg2[%c0_1, %c0_2] : memref<16x128xf32, #tpu.memory_space<vmem>>, vector<16x128xf32>
    %cst = arith.constant dense<0.000000e+00> : vector<128x128xf32>
    %2 = tpu.matmul %0, %1, %cst {dimension_numbers = #tpu.dot_dimension_numbers<[1], [0], [0], [1], [0, 0, 1, 1], [], []>} : vector<128x16xf32>, vector<16x128xf32>, vector<128x128xf32> -> vector<128x128xf32>
    %c0_3 = arith.constant 0 : index
    %c0_4 = arith.constant 0 : index
    %3 = vector.load %arg3[%c0_3, %c0_4] : memref<1x128xf32, #tpu.memory_space<vmem>>, vector<1x128xf32>
    %4 = vector.broadcast %3 : vector<1x128xf32> to vector<128x128xf32>
    %5 = arith.addf %2, %4 : vector<128x128xf32>
    %cst_5 = arith.constant 0.000000e+00 : f32
    %6 = vector.broadcast %cst_5 : f32 to vector<128x128xf32>
    %7 = arith.maximumf %5, %6 : vector<128x128xf32>
    %c0_6 = arith.constant 0 : index
    %c0_7 = arith.constant 0 : index
    %8 = vector.load %arg4[%c0_6, %c0_7] : memref<128x128xf32, #tpu.memory_space<vmem>>, vector<128x128xf32>
    %cst_8 = arith.constant dense<0.000000e+00> : vector<128x128xf32>
    %9 = tpu.matmul %7, %8, %cst_8 {dimension_numbers = #tpu.dot_dimension_numbers<[1], [0], [0], [1], [0, 0, 1, 1], [], []>} : vector<128x128xf32>, vector<128x128xf32>, vector<128x128xf32> -> vector<128x128xf32>
    %c0_9 = arith.constant 0 : index
    %c0_10 = arith.constant 0 : index
    %10 = vector.load %arg5[%c0_9, %c0_10] : memref<1x128xf32, #tpu.memory_space<vmem>>, vector<1x128xf32>
    %11 = vector.broadcast %10 : vector<1x128xf32> to vector<128x128xf32>
    %12 = arith.addf %9, %11 : vector<128x128xf32>
    %cst_11 = arith.constant 0.000000e+00 : f32
    %13 = vector.broadcast %cst_11 : f32 to vector<128x128xf32>
    %14 = arith.maximumf %12, %13 : vector<128x128xf32>
    %c0_12 = arith.constant 0 : index
    %c0_13 = arith.constant 0 : index
    %15 = vector.load %arg6[%c0_12, %c0_13] : memref<128x128xf32, #tpu.memory_space<vmem>>, vector<128x128xf32>
    %cst_14 = arith.constant dense<0.000000e+00> : vector<128x128xf32>
    %16 = tpu.matmul %14, %15, %cst_14 {dimension_numbers = #tpu.dot_dimension_numbers<[1], [0], [0], [1], [0, 0, 1, 1], [], []>} : vector<128x128xf32>, vector<128x128xf32>, vector<128x128xf32> -> vector<128x128xf32>
    %c0_15 = arith.constant 0 : index
    %c0_16 = arith.constant 0 : index
    %17 = vector.load %arg7[%c0_15, %c0_16] : memref<1x128xf32, #tpu.memory_space<vmem>>, vector<1x128xf32>
    %18 = vector.broadcast %17 : vector<1x128xf32> to vector<128x128xf32>
    %19 = arith.addf %16, %18 : vector<128x128xf32>
    %c0_17 = arith.constant 0 : index
    %c0_18 = arith.constant 0 : index
    %20 = vector.load %arg8[%c0_17, %c0_18] : memref<128x128xf32, #tpu.memory_space<vmem>>, vector<128x128xf32>
    tpu.vector_store %arg8[%c0_17, %c0_18], %19 {strides = array<i32>} : memref<128x128xf32, #tpu.memory_space<vmem>>, vector<128x128xf32>,
    return
  }
  func.func @transform_0(%arg0: i32) -> (i32, i32) {
    %c0_i32 = arith.constant 0 : i32
    %c0_i32_0 = arith.constant 0 : i32
    return %arg0, %c0_i32 : i32, i32
  }
  func.func @transform_1(%arg0: i32) -> (i32, i32) {
    %c0_i32 = arith.constant 0 : i32
    %c0_i32_0 = arith.constant 0 : i32
    %c0_i32_1 = arith.constant 0 : i32
    return %c0_i32, %c0_i32_0 : i32, i32
  }
  func.func @transform_2(%arg0: i32) -> (i32, i32) {
    %c0_i32 = arith.constant 0 : i32
    %c0_i32_0 = arith.constant 0 : i32
    %c0_i32_1 = arith.constant 0 : i32
    return %c0_i32, %c0_i32_0 : i32, i32
  }
  func.func @transform_3(%arg0: i32) -> (i32, i32) {
    %c0_i32 = arith.constant 0 : i32
    %c0_i32_0 = arith.constant 0 : i32
    %c0_i32_1 = arith.constant 0 : i32
    return %c0_i32, %c0_i32_0 : i32, i32
  }
  func.func @transform_4(%arg0: i32) -> (i32, i32) {
    %c0_i32 = arith.constant 0 : i32
    %c0_i32_0 = arith.constant 0 : i32
    %c0_i32_1 = arith.constant 0 : i32
    return %c0_i32, %c0_i32_0 : i32, i32
  }
  func.func @transform_5(%arg0: i32) -> (i32, i32) {
    %c0_i32 = arith.constant 0 : i32
    %c0_i32_0 = arith.constant 0 : i32
    %c0_i32_1 = arith.constant 0 : i32
    return %c0_i32, %c0_i32_0 : i32, i32
  }
  func.func @transform_6(%arg0: i32) -> (i32, i32) {
    %c0_i32 = arith.constant 0 : i32
    %c0_i32_0 = arith.constant 0 : i32
    %c0_i32_1 = arith.constant 0 : i32
    return %c0_i32, %c0_i32_0 : i32, i32
  }
  func.func @transform_7(%arg0: i32) -> (i32, i32) {
    %c0_i32 = arith.constant 0 : i32
    %c0_i32_0 = arith.constant 0 : i32
    return %arg0, %c0_i32 : i32, i32
  }
}

</mosaic_0001>

<bundles_post_ra>
// kernel: dqn_forward.1
= control target key start
LH: loop header
LB: loop body
LE: loop exit
PB: predicated region body
PF: predicated region fallthrough
CT: control target
= control target key end

     0   :  { %s810_s24 = smov 0   ;;  %s1015_s0 = inlined_call_operand.vmem [shape: f32[256,16], index: 0, kind: input, shape index: {}]   ;;  %s1016_s1 = inlined_call_operand.vmem [shape: f32[16,128], index: 1, kind: input, shape index: {}]   ;;  %s1017_s2 = inlined_call_operand.vmem [shape: f32[1,128], index: 2, kind: input, shape index: {}]   ;;  %s1018_s3 = inlined_call_operand.vmem [shape: f32[128,128], index: 3, kind: input, shape index: {}]   ;;  %s1019_s4 = inlined_call_operand.vmem [shape: f32[1,128], index: 4, kind: input, shape index: {}]   ;;  %s1020_s5 = inlined_call_operand.vmem [shape: f32[128,128], index: 5, kind: input, shape index: {}]   ;;  %s1021_s6 = inlined_call_operand.vmem [shape: f32[1,128], index: 6, kind: input, shape index: {}]   ;;  %s1022_s7 = inlined_call_operand.vmem [shape: f32[256,128], index: 7, kind: output, shape index: {}]  }
   0x1 LB: > { %s692_s25 = sadd.s32 4294967295, %s768_s24   ;;  %p696_p0 = scmp.ge.s32.totalorder %s768_s24, 1  ;;  %s768_s24 = sphi %s810_s24, %s17_s24  }
   0x2   : > { %p238_p1 = scmp.lt.s32.totalorder %s768_s24, 3 }
   0x4   : > { %p239_p2 = pnand %p696_p0, %p238_p1 }
   0x5   : > { %s697_s30 = sshll.u32 (!%p239_p2), %s692_s25, 4 }
   0x6   : > { %242 = sbr.rel (%p239_p2) target bundleno = 536 (0x218), region = 48  ;;  %p271_p3 = scmp.lt.s32.totalorder (!%p239_p2), %s697_s30, 31 }
   0xb   : > { %v299_v0 = vld [vmem:[%s1016_s1 + $0x8] sm:$0xff]  ;;  %v298_v1 = vld [vmem:[%s1016_s1] sm:$0xff]  ;;  %s1024_s30 = smov (!%p271_p3, %s697_s30), 31  ;;  %vm304_vm0 = vcmask 130048   ;;  %v449_v11 = vld [vmem:[%s1018_s3 + $0x78] sm:$0xff] }
   0xc   : > { %367 = vmatpush.msra.mxu0 %v299_v0  ;;  %s698_s8 = sshll.u32 %s1024_s30, 3  ;;  %v448_v12 = vld [vmem:[%s1018_s3 + $0x70] sm:$0xff]  ;;  %454 = vmatpush.msra.mxu1 %v449_v11  ;;  %v447_v13 = vld [vmem:[%s1018_s3 + $0x68] sm:$0xff]  ;;  %v446_v15 = vld [vmem:[%s1018_s3 + $0x60] sm:$0xff] }
   0xd   : > { %s832_s11 = scalar_lea.vmem %s1015_s0, %s698_s8  ;;  %719 = vmatpush.msra.mxu3 %v449_v11  ;;  %v445_v16 = vld [vmem:[%s1018_s3 + $0x58] sm:$0xff]  ;;  %v444_v17 = vld [vmem:[%s1018_s3 + $0x50] sm:$0xff]  ;;  %v443_v18 = vld [vmem:[%s1018_s3 + $0x48] sm:$0xff]  ;;  %s994_s26 = scalar_lea.vmem %s1022_s7, %s698_s8 }
   0xe   : > { %368 = vmatpush.msra.mxu0 %v298_v1  ;;  %v282_v2 = vld [vmem:[%s832_s11] sm:$0xff]  ;;  %v283_v3 = vld [vmem:[%s832_s11 + $0x8] sm:$0xff]  ;;  %v284_v4 = vld [vmem:[%s832_s11 + $0x10] sm:$0xff]  ;;  %455 = vmatpush.msra.mxu1 %v448_v12 }
   0xf   : > { %701 = vmatmul.msk.f32.vlgmr.msra.gmra.mxu0 %vm304_vm0, %v282_v2  ;;  %v285_v5 = vld [vmem:[%s832_s11 + $0x18] sm:$0xff]  ;;  %v286_v6 = vld [vmem:[%s832_s11 + $0x20] sm:$0xff]  ;;  %v287_v7 = vld [vmem:[%s832_s11 + $0x28] sm:$0xff]  ;;  %720 = vmatpush.msra.mxu3 %v448_v12 }
  0x10   : > { %v288_v8 = vld [vmem:[%s832_s11 + $0x30] sm:$0xff]  ;;  %v289_v9 = vld [vmem:[%s832_s11 + $0x38] sm:$0xff]  ;;  %v290_v10 = vld [vmem:[%s832_s11 + $0x40] sm:$0xff]  ;;  %456 = vmatpush.msra.mxu1 %v447_v13 }
  0x11   : > { %v291_v14 = vld [vmem:[%s832_s11 + $0x48] sm:$0xff]  ;;  %721 = vmatpush.msra.mxu3 %v447_v13  ;;  %v292_v19 = vld [vmem:[%s832_s11 + $0x50] sm:$0xff]  ;;  %v442_v20 = vld [vmem:[%s1018_s3 + $0x40] sm:$0xff] }
  0x12   : > { %457 = vmatpush.msra.mxu1 %v446_v15  ;;  %v441_v21 = vld [vmem:[%s1018_s3 + $0x38] sm:$0xff]  ;;  %v440_v22 = vld [vmem:[%s1018_s3 + $0x30] sm:$0xff]  ;;  %v439_v23 = vld [vmem:[%s1018_s3 + $0x28] sm:$0xff] }
  0x13   : > { %722 = vmatpush.msra.mxu3 %v446_v15  ;;  %v293_v24 = vld [vmem:[%s832_s11 + $0x58] sm:$0xff]  ;;  %v438_v25 = vld [vmem:[%s1018_s3 + $0x20] sm:$0xff]  ;;  %v436_v27 = vld [vmem:[%s1018_s3 + $0x10] sm:$0xff] }
  0x14   : > { %458 = vmatpush.msra.mxu1 %v445_v16  ;;  %v437_v26 = vld [vmem:[%s1018_s3 + $0x18] sm:$0xff]  ;;  %v294_v28 = vld [vmem:[%s832_s11 + $0x60] sm:$0xff]  ;;  %v435_v29 = vld [vmem:[%s1018_s3 + $0x8] sm:$0xff] }
  0x15   : > { %723 = vmatpush.msra.mxu3 %v445_v16  ;;  %v434_v30 = vld [vmem:[%s1018_s3] sm:$0xff]  ;;  %v295_v31 = vld [vmem:[%s832_s11 + $0x68] sm:$0xff]  ;;  %v296_v32 = vld [vmem:[%s832_s11 + $0x70] sm:$0xff] }
  0x16   : > { %459 = vmatpush.msra.mxu1 %v444_v17  ;;  %v297_v33 = vld [vmem:[%s832_s11 + $0x78] sm:$0xff]  ;;  %v917_v34 = vld [vmem:[%s1017_s2] ss:$0 sm:$0xff]  ;;  %v549_v1 = vld [vmem:[%s1020_s5 + $0x70] sm:$0xff] }
  0x17   : > { %702 = vmatmul.msk.f32.gmra.mxu0 %vm304_vm0, %v283_v3  ;;  %724 = vmatpush.msra.mxu3 %v444_v17  ;;  %v550_v62 = vld [vmem:[%s1020_s5 + $0x78] sm:$0xff]  ;;  %v548_v3 = vld [vmem:[%s1020_s5 + $0x68] sm:$0xff]  ;;  %v543_v11 = vld [vmem:[%s1020_s5 + $0x40] sm:$0xff] }
  0x18   : > { %460 = vmatpush.msra.mxu1 %v443_v18  ;;  %555 = vmatpush.msra.mxu2 %v550_v62  ;;  %v542_v12 = vld [vmem:[%s1020_s5 + $0x38] sm:$0xff]  ;;  %v541_v15 = vld [vmem:[%s1020_s5 + $0x30] sm:$0xff]  ;;  %v540_v17 = vld [vmem:[%s1020_s5 + $0x28] sm:$0xff] }
  0x19   : > { %725 = vmatpush.msra.mxu3 %v443_v18  ;;  %v539_v18 = vld [vmem:[%s1020_s5 + $0x20] sm:$0xff] }
  0x1a   : > { %461 = vmatpush.msra.mxu1 %v442_v20  ;;  %556 = vmatpush.msra.mxu2 %v549_v1 }
  0x1b   : > { %726 = vmatpush.msra.mxu3 %v442_v20 }
  0x1c   : > { %462 = vmatpush.msra.mxu1 %v441_v21  ;;  %557 = vmatpush.msra.mxu2 %v548_v3 }
  0x1d   : > { %727 = vmatpush.msra.mxu3 %v441_v21 }
  0x1e   : > { %463 = vmatpush.msra.mxu1 %v440_v22 }
  0x1f   : > { %703 = vmatmul.msk.f32.gmra.mxu0 %vm304_vm0, %v284_v4  ;;  %728 = vmatpush.msra.mxu3 %v440_v22  ;;  %v547_v4 = vld [vmem:[%s1020_s5 + $0x60] sm:$0xff]  ;;  %v537_v22 = vld [vmem:[%s1020_s5 + $0x10] sm:$0xff] }
  0x20   : > { %464 = vmatpush.msra.mxu1 %v439_v23  ;;  %558 = vmatpush.msra.mxu2 %v547_v4 }
  0x21   : > { %729 = vmatpush.msra.mxu3 %v439_v23 }
  0x22   : > { %465 = vmatpush.msra.mxu1 %v438_v25 }
  0x23   : > { %730 = vmatpush.msra.mxu3 %v438_v25  ;;  %v535_v25 = vld [vmem:[%s1020_s5] sm:$0xff] }
  0x24   : > { %466 = vmatpush.msra.mxu1 %v437_v26 }
  0x25   : > { %731 = vmatpush.msra.mxu3 %v437_v26 }
  0x26   : > { %467 = vmatpush.msra.mxu1 %v436_v27 }
  0x27   : > { %704 = vmatmul.msk.f32.gmra.mxu0 %vm304_vm0, %v285_v5  ;;  %732 = vmatpush.msra.mxu3 %v436_v27  ;;  %v546_v5 = vld [vmem:[%s1020_s5 + $0x58] sm:$0xff] }
  0x28   : > { %468 = vmatpush.msra.mxu1 %v435_v29  ;;  %559 = vmatpush.msra.mxu2 %v546_v5 }
  0x29   : > { %733 = vmatpush.msra.mxu3 %v435_v29 }
  0x2a   : > { %469 = vmatpush.msra.mxu1 %v434_v30 }
  0x2b   : > { %734 = vmatpush.msra.mxu3 %v434_v30 }
  0x2d   : > { %735 = vmatpush.msrb.mxu3 %v550_v62 }
  0x2f   : > { %705 = vmatmul.msk.f32.gmra.mxu0 %vm304_vm0, %v286_v6  ;;  %736 = vmatpush.msrb.mxu3 %v549_v1 }
  0x31   : > { %737 = vmatpush.msrb.mxu3 %v548_v3 }
  0x33   : > { %738 = vmatpush.msrb.mxu3 %v547_v4 }
  0x35   : > { %739 = vmatpush.msrb.mxu3 %v546_v5 }
  0x37   : > { %706 = vmatmul.msk.f32.gmra.mxu0 %vm304_vm0, %v287_v7 }
  0x3f   : > { %707 = vmatmul.msk.f32.gmra.mxu0 %vm304_vm0, %v288_v8  ;;  %v545_v8 = vld [vmem:[%s1020_s5 + $0x50] sm:$0xff] }
  0x40   : > { %560 = vmatpush.msra.mxu2 %v545_v8  ;;  %740 = vmatpush.msrb.mxu3 %v545_v8 }
  0x47   : > { %708 = vmatmul.msk.f32.gmra.mxu0 %vm304_vm0, %v289_v9 }
  0x4f   : > { %709 = vmatmul.msk.f32.gmra.mxu0 %vm304_vm0, %v290_v10  ;;  %v544_v10 = vld [vmem:[%s1020_s5 + $0x48] sm:$0xff] }
  0x50   : > { %561 = vmatpush.msra.mxu2 %v544_v10  ;;  %741 = vmatpush.msrb.mxu3 %v544_v10 }
  0x52   : > { %562 = vmatpush.msra.mxu2 %v543_v11  ;;  %742 = vmatpush.msrb.mxu3 %v543_v11 }
  0x54   : > { %563 = vmatpush.msra.mxu2 %v542_v12  ;;  %743 = vmatpush.msrb.mxu3 %v542_v12 }
  0x56   : > { %564 = vmatpush.msra.mxu2 %v541_v15  ;;  %744 = vmatpush.msrb.mxu3 %v541_v15 }
  0x57   : > { %710 = vmatmul.msk.f32.gmra.mxu0 %vm304_vm0, %v291_v14 }
  0x58   : > { %565 = vmatpush.msra.mxu2 %v540_v17  ;;  %745 = vmatpush.msrb.mxu3 %v540_v17 }
  0x5a   : > { %566 = vmatpush.msra.mxu2 %v539_v18  ;;  %746 = vmatpush.msrb.mxu3 %v539_v18 }
  0x5f   : > { %711 = vmatmul.msk.f32.gmra.mxu0 %vm304_vm0, %v292_v19  ;;  %v538_v19 = vld [vmem:[%s1020_s5 + $0x18] sm:$0xff] }
  0x60   : > { %567 = vmatpush.msra.mxu2 %v538_v19  ;;  %747 = vmatpush.msrb.mxu3 %v538_v19 }
  0x62   : > { %568 = vmatpush.msra.mxu2 %v537_v22  ;;  %748 = vmatpush.msrb.mxu3 %v537_v22 }
  0x67   : > { %712 = vmatmul.msk.f32.gmra.mxu0 %vm304_vm0, %v293_v24  ;;  %v536_v24 = vld [vmem:[%s1020_s5 + $0x8] sm:$0xff] }
  0x68   : > { %569 = vmatpush.msra.mxu2 %v536_v24  ;;  %749 = vmatpush.msrb.mxu3 %v536_v24 }
  0x6a   : > { %570 = vmatpush.msra.mxu2 %v535_v25  ;;  %750 = vmatpush.msrb.mxu3 %v535_v25 }
  0x6f   : > { %713 = vmatmul.msk.f32.gmra.mxu0 %vm304_vm0, %v294_v28 }
  0x77   : > { %714 = vmatmul.msk.f32.gmra.mxu0 %vm304_vm0, %v295_v31 }
  0x7f   : > { %715 = vmatmul.msk.f32.gmra.mxu0 %vm304_vm0, %v296_v32 }
  0x87   : > { %716 = vmatmul.msk.f32.gmra.mxu0 %vm304_vm0, %v297_v33 }
  0x8c   : > { %v370_v35 = vpop.f32.mrf.mxu0 }
  0x8d   : > { %v371_v36 = vadd.f32 %v917_v34, %v370_v35 }
  0x8f   : > { %v418_v37 = vmax.f32 %v371_v36, 0.0  ;;  %v760_v36 = vld [vmem:[%s1019_s4] ss:$0 sm:$0xff] }
  0x91   : > { %470 = vmatmul.f32.vlgmr.msra.gmra.mxu1 %v418_v37 }
  0x94   : > { %v373_v38 = vpop.f32.mrf.mxu0 }
  0x95   : > { %v374_v39 = vadd.f32 %v917_v34, %v373_v38 }
  0x97   : > { %v419_v40 = vmax.f32 %v374_v39, 0.0 }
  0x99   : > { %473 = vmatmul.f32.gmra.mxu1 %v419_v40 }
  0x9c   : > { %v376_v41 = vpop.f32.mrf.mxu0 }
  0x9d   : > { %v377_v42 = vadd.f32 %v917_v34, %v376_v41 }
  0x9f   : > { %v420_v43 = vmax.f32 %v377_v42, 0.0 }
  0xa1   : > { %476 = vmatmul.f32.gmra.mxu1 %v420_v43 }
  0xa4   : > { %v379_v44 = vpop.f32.mrf.mxu0 }
  0xa5   : > { %v380_v45 = vadd.f32 %v917_v34, %v379_v44 }
  0xa7   : > { %v421_v46 = vmax.f32 %v380_v45, 0.0 }
  0xa9   : > { %479 = vmatmul.f32.gmra.mxu1 %v421_v46 }
  0xac   : > { %v382_v47 = vpop.f32.mrf.mxu0 }
  0xad   : > { %v383_v48 = vadd.f32 %v917_v34, %v382_v47 }
  0xaf   : > { %v422_v49 = vmax.f32 %v383_v48, 0.0 }
  0xb1   : > { %482 = vmatmul.f32.gmra.mxu1 %v422_v49 }
  0xb4   : > { %v385_v50 = vpop.f32.mrf.mxu0 }
  0xb5   : > { %v386_v51 = vadd.f32 %v917_v34, %v385_v50 }
  0xb7   : > { %v423_v52 = vmax.f32 %v386_v51, 0.0 }
  0xb9   : > { %485 = vmatmul.f32.gmra.mxu1 %v423_v52 }
  0xbc   : > { %v388_v53 = vpop.f32.mrf.mxu0 }
  0xbd   : > { %v389_v54 = vadd.f32 %v917_v34, %v388_v53 }
  0xbf   : > { %v424_v55 = vmax.f32 %v389_v54, 0.0 }
  0xc1   : > { %488 = vmatmul.f32.gmra.mxu1 %v424_v55 }
  0xc4   : > { %v391_v56 = vpop.f32.mrf.mxu0 }
  0xc5   : > { %v392_v57 = vadd.f32 %v917_v34, %v391_v56 }
  0xc7   : > { %v425_v58 = vmax.f32 %v392_v57, 0.0 }
  0xc9   : > { %491 = vmatmul.f32.gmra.mxu1 %v425_v58 }
  0xcc   : > { %v394_v59 = vpop.f32.mrf.mxu0 }
  0xcd   : > { %v395_v60 = vadd.f32 %v917_v34, %v394_v59 }
  0xcf   : > { %v426_v61 = vmax.f32 %v395_v60, 0.0 }
  0xd1   : > { %494 = vmatmul.f32.gmra.mxu1 %v426_v61 }
  0xd4   : > { %v397_v63 = vpop.f32.mrf.mxu0 }
  0xd5   : > { %v398_v0 = vadd.f32 %v917_v34, %v397_v63 }
  0xd7   : > { %v427_v2 = vmax.f32 %v398_v0, 0.0 }
  0xd9   : > { %497 = vmatmul.f32.gmra.mxu1 %v427_v2 }
  0xdc   : > { %v400_v6 = vpop.f32.mrf.mxu0 }
  0xdd   : > { %v401_v7 = vadd.f32 %v917_v34, %v400_v6 }
  0xdf   : > { %v428_v9 = vmax.f32 %v401_v7, 0.0 }
  0xe1   : > { %500 = vmatmul.f32.gmra.mxu1 %v428_v9 }
  0xe4   : > { %v403_v13 = vpop.f32.mrf.mxu0 }
  0xe5   : > { %v404_v14 = vadd.f32 %v917_v34, %v403_v13 }
  0xe7   : > { %v429_v16 = vmax.f32 %v404_v14, 0.0 }
  0xe9   : > { %503 = vmatmul.f32.gmra.mxu1 %v429_v16 }
  0xec   : > { %v406_v20 = vpop.f32.mrf.mxu0 }
  0xed   : > { %v407_v21 = vadd.f32 %v917_v34, %v406_v20  ;;  %v761_v20 = vld [vmem:[%s1021_s6] ss:$0 sm:$0xff] }
  0xef   : > { %v430_v23 = vmax.f32 %v407_v21, 0.0 }
  0xf1   : > { %506 = vmatmul.f32.vlgmr.msra.gmra.mxu3 %v430_v23 }
  0xf4   : > { %v409_v26 = vpop.f32.mrf.mxu0 }
  0xf5   : > { %v410_v27 = vadd.f32 %v917_v34, %v409_v26 }
  0xf7   : > { %v431_v28 = vmax.f32 %v410_v27, 0.0 }
  0xf9   : > { %509 = vmatmul.f32.gmra.mxu3 %v431_v28 }
  0xfc   : > { %v412_v29 = vpop.f32.mrf.mxu0 }
  0xfd   : > { %v413_v30 = vadd.f32 %v917_v34, %v412_v29 }
  0xff   : > { %v432_v31 = vmax.f32 %v413_v30, 0.0 }
 0x101   : > { %512 = vmatmul.f32.gmra.mxu3 %v432_v31 }
 0x104   : > { %v415_v32 = vpop.f32.mrf.mxu0 }
 0x105   : > { %v416_v33 = vadd.f32 %v917_v34, %v415_v32 }
 0x107   : > { %v433_v35 = vmax.f32 %v416_v33, 0.0 }
 0x109   : > { %515 = vmatmul.f32.gmra.mxu3 %v433_v35 }
 0x10e   : > { %v471_v37 = vpop.f32.mrf.mxu1 }
 0x10f   : > { %v472_v38 = vadd.f32 %v760_v36, %v471_v37 }
 0x111   : > { %v519_v39 = vmax.f32 %v472_v38, 0.0 }
 0x113   : > { %571 = vmatmul.f32.vlgmr.msra.gmra.mxu2 %v519_v39 }
 0x116   : > { %v474_v40 = vpop.f32.mrf.mxu1 }
 0x117   : > { %v475_v41 = vadd.f32 %v760_v36, %v474_v40 }
 0x119   : > { %v520_v42 = vmax.f32 %v475_v41, 0.0 }
 0x11b   : > { %574 = vmatmul.f32.gmra.mxu2 %v520_v42 }
 0x11e   : > { %v477_v43 = vpop.f32.mrf.mxu1 }
 0x11f   : > { %v478_v44 = vadd.f32 %v760_v36, %v477_v43 }
 0x121   : > { %v521_v45 = vmax.f32 %v478_v44, 0.0 }
 0x123   : > { %577 = vmatmul.f32.gmra.mxu2 %v521_v45 }
 0x126   : > { %v480_v46 = vpop.f32.mrf.mxu1 }
 0x127   : > { %v481_v34 = vadd.f32 %v760_v36, %v480_v46 }
 0x129   : > { %v522_v47 = vmax.f32 %v481_v34, 0.0 }
 0x12b   : > { %580 = vmatmul.f32.gmra.mxu2 %v522_v47 }
 0x12e   : > { %v483_v48 = vpop.f32.mrf.mxu1 }
 0x12f   : > { %v484_v49 = vadd.f32 %v760_v36, %v483_v48 }
 0x131   : > { %v523_v50 = vmax.f32 %v484_v49, 0.0 }
 0x133   : > { %583 = vmatmul.f32.gmra.mxu2 %v523_v50 }
 0x136   : > { %v486_v51 = vpop.f32.mrf.mxu1 }
 0x137   : > { %v487_v52 = vadd.f32 %v760_v36, %v486_v51 }
 0x139   : > { %v524_v53 = vmax.f32 %v487_v52, 0.0 }
 0x13b   : > { %586 = vmatmul.f32.gmra.mxu2 %v524_v53 }
 0x13e   : > { %v489_v54 = vpop.f32.mrf.mxu1 }
 0x13f   : > { %v490_v55 = vadd.f32 %v760_v36, %v489_v54 }
 0x141   : > { %v525_v56 = vmax.f32 %v490_v55, 0.0 }
 0x143   : > { %589 = vmatmul.f32.gmra.mxu2 %v525_v56 }
 0x146   : > { %v492_v57 = vpop.f32.mrf.mxu1 }
 0x147   : > { %v493_v58 = vadd.f32 %v760_v36, %v492_v57 }
 0x149   : > { %v526_v59 = vmax.f32 %v493_v58, 0.0 }
 0x14b   : > { %592 = vmatmul.f32.gmra.mxu2 %v526_v59 }
 0x14e   : > { %v495_v60 = vpop.f32.mrf.mxu1 }
 0x14f   : > { %v496_v61 = vadd.f32 %v760_v36, %v495_v60 }
 0x151   : > { %v527_v62 = vmax.f32 %v496_v61, 0.0 }
 0x153   : > { %595 = vmatmul.f32.gmra.mxu2 %v527_v62 }
 0x156   : > { %v498_v63 = vpop.f32.mrf.mxu1 }
 0x157   : > { %v499_v0 = vadd.f32 %v760_v36, %v498_v63 }
 0x159   : > { %v528_v1 = vmax.f32 %v499_v0, 0.0 }
 0x15b   : > { %598 = vmatmul.f32.gmra.mxu2 %v528_v1 }
 0x15e   : > { %v501_v2 = vpop.f32.mrf.mxu1 }
 0x15f   : > { %v502_v3 = vadd.f32 %v760_v36, %v501_v2 }
 0x161   : > { %v529_v4 = vmax.f32 %v502_v3, 0.0 }
 0x163   : > { %601 = vmatmul.f32.gmra.mxu2 %v529_v4 }
 0x166   : > { %v504_v5 = vpop.f32.mrf.mxu1 }
 0x167   : > { %v505_v6 = vadd.f32 %v760_v36, %v504_v5 }
 0x169   : > { %v530_v7 = vmax.f32 %v505_v6, 0.0 }
 0x16b   : > { %604 = vmatmul.f32.gmra.mxu2 %v530_v7 }
 0x174   : > { %v507_v8 = vpop.f32.mrf.mxu3 }
 0x175   : > { %v508_v9 = vadd.f32 %v760_v36, %v507_v8 }
 0x177   : > { %v531_v10 = vmax.f32 %v508_v9, 0.0 }
 0x179   : > { %607 = vmatmul.f32.vlgmr.msrb.gmra.mxu3 %v531_v10 }
 0x17c   : > { %v510_v11 = vpop.f32.mrf.mxu3 }
 0x17d   : > { %v511_v12 = vadd.f32 %v760_v36, %v510_v11 }
 0x17f   : > { %v532_v13 = vmax.f32 %v511_v12, 0.0 }
 0x181   : > { %610 = vmatmul.f32.gmra.mxu3 %v532_v13 }
 0x184   : > { %v513_v14 = vpop.f32.mrf.mxu3 }
 0x185   : > { %v514_v15 = vadd.f32 %v760_v36, %v513_v14 }
 0x187   : > { %v533_v16 = vmax.f32 %v514_v15, 0.0 }
 0x189   : > { %613 = vmatmul.f32.gmra.mxu3 %v533_v16 }
 0x18c   : > { %v516_v17 = vpop.f32.mrf.mxu3 }
 0x18d   : > { %v517_v18 = vadd.f32 %v760_v36, %v516_v17 }
 0x18f   : > { %v534_v19 = vmax.f32 %v517_v18, 0.0 }
 0x191   : > { %616 = vmatmul.f32.gmra.mxu3 %v534_v19 }
 0x196   : > { %v572_v21 = vpop.f32.mrf.mxu2 }
 0x197   : > { %v573_v22 = vadd.f32 %v761_v20, %v572_v21 }
 0x199   : > { %620 = vst [vmem:[%s994_s26] sm:$0xff] %v573_v22 }
 0x19e   : > { %v575_v23 = vpop.f32.mrf.mxu2 }
 0x19f   : > { %v576_v24 = vadd.f32 %v761_v20, %v575_v23 }
 0x1a1   : > { %621 = vst [vmem:[%s994_s26 + $0x8] sm:$0xff] %v576_v24 }
 0x1a6   : > { %v578_v25 = vpop.f32.mrf.mxu2 }
 0x1a7   : > { %v579_v26 = vadd.f32 %v761_v20, %v578_v25 }
 0x1a9   : > { %622 = vst [vmem:[%s994_s26 + $0x10] sm:$0xff] %v579_v26 }
 0x1ae   : > { %v581_v27 = vpop.f32.mrf.mxu2 }
 0x1af   : > { %v582_v28 = vadd.f32 %v761_v20, %v581_v27 }
 0x1b1   : > { %623 = vst [vmem:[%s994_s26 + $0x18] sm:$0xff] %v582_v28 }
 0x1b6   : > { %v584_v29 = vpop.f32.mrf.mxu2 }
 0x1b7   : > { %v585_v30 = vadd.f32 %v761_v20, %v584_v29 }
 0x1b9   : > { %624 = vst [vmem:[%s994_s26 + $0x20] sm:$0xff] %v585_v30 }
 0x1be   : > { %v587_v31 = vpop.f32.mrf.mxu2 }
 0x1bf   : > { %v588_v32 = vadd.f32 %v761_v20, %v587_v31 }
 0x1c1   : > { %625 = vst [vmem:[%s994_s26 + $0x28] sm:$0xff] %v588_v32 }
 0x1c6   : > { %v590_v33 = vpop.f32.mrf.mxu2 }
 0x1c7   : > { %v591_v35 = vadd.f32 %v761_v20, %v590_v33 }
 0x1c9   : > { %626 = vst [vmem:[%s994_s26 + $0x30] sm:$0xff] %v591_v35 }
 0x1ce   : > { %v593_v36 = vpop.f32.mrf.mxu2 }
 0x1cf   : > { %v594_v37 = vadd.f32 %v761_v20, %v593_v36 }
 0x1d1   : > { %627 = vst [vmem:[%s994_s26 + $0x38] sm:$0xff] %v594_v37 }
 0x1d6   : > { %v596_v38 = vpop.f32.mrf.mxu2 }
 0x1d7   : > { %v597_v39 = vadd.f32 %v761_v20, %v596_v38 }
 0x1d9   : > { %628 = vst [vmem:[%s994_s26 + $0x40] sm:$0xff] %v597_v39 }
 0x1de   : > { %v599_v40 = vpop.f32.mrf.mxu2 }
 0x1df   : > { %v600_v41 = vadd.f32 %v761_v20, %v599_v40 }
 0x1e1   : > { %629 = vst [vmem:[%s994_s26 + $0x48] sm:$0xff] %v600_v41 }
 0x1e6   : > { %v602_v42 = vpop.f32.mrf.mxu2 }
 0x1e7   : > { %v603_v43 = vadd.f32 %v761_v20, %v602_v42 }
 0x1e9   : > { %630 = vst [vmem:[%s994_s26 + $0x50] sm:$0xff] %v603_v43 }
 0x1ee   : > { %v605_v44 = vpop.f32.mrf.mxu2 }
 0x1ef   : > { %v606_v45 = vadd.f32 %v761_v20, %v605_v44 }
 0x1f1   : > { %631 = vst [vmem:[%s994_s26 + $0x58] sm:$0xff] %v606_v45 }
 0x1fc   : > { %v608_v46 = vpop.f32.mrf.mxu3 }
 0x1fd   : > { %v609_v34 = vadd.f32 %v761_v20, %v608_v46 }
 0x1ff   : > { %632 = vst [vmem:[%s994_s26 + $0x60] sm:$0xff] %v609_v34 }
 0x204   : > { %v611_v47 = vpop.f32.mrf.mxu3 }
 0x205   : > { %v612_v48 = vadd.f32 %v761_v20, %v611_v47 }
 0x207   : > { %633 = vst [vmem:[%s994_s26 + $0x68] sm:$0xff] %v612_v48 }
 0x20c   : > { %v614_v49 = vpop.f32.mrf.mxu3 }
 0x20d   : > { %v615_v50 = vadd.f32 %v761_v20, %v614_v49 }
 0x20f   : > { %634 = vst [vmem:[%s994_s26 + $0x70] sm:$0xff] %v615_v50 }
 0x214   : > { %v617_v51 = vpop.f32.mrf.mxu3 }
 0x215   : > { %v618_v52 = vadd.f32 %v761_v20, %v617_v51 }
 0x217   : > { %635 = vst [vmem:[%s994_s26 + $0x78] sm:$0xff] %v618_v52 }
 0x218 PF: > { %s17_s24 = sadd.s32 1, %s768_s24  }
 0x219   : > { %p14_p4 = scmp.ge.s32.totalorder %s17_s24, 4  }
 0x21b   :  { %16 = sbr.rel (!%p14_p4) target bundleno = 1 (0x1), region = 78 }

</bundles_post_ra>
